<compile_context>
chip_gen: v7x
topology: tpu7x:2x2x1
jax: 0.10.0
libtpu: 0.0.40
codegen_flags: <defaults>
</compile_context>

<pallas_src>
import jax
import jax.numpy as jnp
from jax.experimental import pallas as pl
from jax.experimental.pallas import tpu as pltpu

_LANE_COLS = 1024                       # lane-dense last dim (multiple of 128)
_TARGET_BLOCK_BYTES = 8 * 1024 * 1024   # ~8 MiB per block
_VMEM_LIMIT_BYTES = 48 * 1024 * 1024    # explicit scoped-VMEM limit (v5e default 16 MiB is too low)


def _relu6_kernel(x_ref, o_ref):
    x = x_ref[...]
    zero = jnp.zeros((), dtype=x.dtype)
    six = jnp.asarray(6, dtype=x.dtype)
    o_ref[...] = jnp.minimum(jnp.maximum(zero, x), six)


def _round_up(v, m):
    return ((v + m - 1) // m) * m


def _clamp06(v, dtype):
    return jnp.minimum(jnp.maximum(v, jnp.zeros((), dtype)), jnp.asarray(6, dtype))


def _relu6_bulk(x2d, tile_rows):
    """Run the Pallas kernel on a lane-dense (rows, 1024) slab."""
    rows, cols = x2d.shape
    itemsize = jnp.dtype(x2d.dtype).itemsize
    nbytes = rows * cols * itemsize
    grid = (pl.cdiv(rows, tile_rows),)   # last block may be partial (masked)
    return pl.pallas_call(
        _relu6_kernel,
        out_shape=jax.ShapeDtypeStruct(x2d.shape, x2d.dtype),
        grid=grid,
        in_specs=[pl.BlockSpec((tile_rows, cols), lambda i: (i, 0))],
        out_specs=pl.BlockSpec((tile_rows, cols), lambda i: (i, 0)),
        compiler_params=pltpu.CompilerParams(
            dimension_semantics=("parallel",),
            vmem_limit_bytes=_VMEM_LIMIT_BYTES,
        ),
        cost_estimate=pl.CostEstimate(
            flops=2 * rows * cols,          # max + min per element
            transcendentals=0,
            bytes_accessed=2 * nbytes,      # read N + write N
        ),
    )(x2d)


def _relu6_impl(x):
    """Elementwise ReLU6 via a Pallas TPU kernel. Accepts any shape/dtype."""
    orig_shape = x.shape
    dtype = x.dtype
    total = x.size
    itemsize = jnp.dtype(dtype).itemsize

    # Sublane packing: 8 rows for 32-bit, 16 for 16-bit, 32 for 8-bit dtypes.
    row_align = max(8, 32 // itemsize)

    flat = x.reshape(-1)

    rows_bulk = total // _LANE_COLS
    bulk_elems = rows_bulk * _LANE_COLS

    if rows_bulk == 0:
        # Tiny input (< one lane-dense row): kernel launch not worth it.
        return _clamp06(flat, dtype).reshape(orig_shape)

    # Target block rows so each block is ~8 MiB regardless of dtype.
    target_rows = max(row_align, _TARGET_BLOCK_BYTES // (_LANE_COLS * itemsize))
    target_rows = _round_up(target_rows, row_align)

    if rows_bulk >= 2 * row_align:
        # Ensure at least two grid blocks so v7x's two TensorCores both stream.
        half_rows = _round_up(pl.cdiv(rows_bulk, 2), row_align)
        tile_rows = min(target_rows, half_rows)
    else:
        # Single full-extent block (block shape == array shape is allowed).
        tile_rows = rows_bulk

    x2d = flat[:bulk_elems].reshape(rows_bulk, _LANE_COLS)
    bulk_out = _relu6_bulk(x2d, tile_rows).reshape(-1)

    if bulk_elems == total:
        return bulk_out.reshape(orig_shape)

    # Small tail (< 1024 elements): clamp directly, no padded kernel pass.
    tail_out = _clamp06(flat[bulk_elems:], dtype)
    return jnp.concatenate([bulk_out, tail_out]).reshape(orig_shape)


relu6 = jax.jit(_relu6_impl)


if __name__ == "__main__":
    key = jax.random.PRNGKey(0)
    # Small NCHW input consistent with a conv-style module: (N=2, C=4, H=16, W=16)
    x = jax.random.normal(key, (2, 4, 16, 16), dtype=jnp.float32) * 8.0
    y = relu6(x)
    jax.block_until_ready(y)
    assert y.shape == x.shape
    assert jnp.allclose(y, jnp.clip(x, 0.0, 6.0)), "mismatch vs reference"

    # Misaligned size: exercises the multi-block path, the partial last block,
    # and the non-padded tail handling.
    x_mid = jax.random.normal(jax.random.PRNGKey(1), (1, 3, 100, 100), dtype=jnp.float32) * 8.0
    y_mid = relu6(x_mid)
    jax.block_until_ready(y_mid)
    assert jnp.allclose(y_mid, jnp.clip(x_mid, 0.0, 6.0)), "mismatch vs reference (mid size)"

    # Tiny input (< one lane-dense row) — pure clamp fallback path.
    x_odd = jax.random.normal(jax.random.PRNGKey(2), (3, 5, 7), dtype=jnp.float32) * 8.0
    y_odd = relu6(x_odd)
    jax.block_until_ready(y_odd)
    assert jnp.allclose(y_odd, jnp.clip(x_odd, 0.0, 6.0)), "mismatch vs reference (odd size)"

    print("KERNEL_OK")
</pallas_src>

<mosaic_0001>
module attributes {stable_mosaic.version = 11 : i64} {
  func.func @_relu6_kernel(%arg0: i32, %arg1: memref<2x1024xf32, #tpu.memory_space<vmem>>, %arg2: memref<2x1024xf32, #tpu.memory_space<vmem>>) attributes {dimension_semantics = [#tpu.dimension_semantics<parallel>], iteration_bounds = array<i64: 1>, scalar_prefetch = 0 : i64, scratch_operands = 0 : i64, tpu.core_type = #tpu.core_type<tc>, window_params = [{transform_indices = @transform_0, window_bounds = array<i64: 2, 1024>}, {transform_indices = @transform_1, window_bounds = array<i64: 2, 1024>}]} {
    %c0 = arith.constant 0 : index
    %c0_0 = arith.constant 0 : index
    %0 = vector.load %arg1[%c0, %c0_0] : memref<2x1024xf32, #tpu.memory_space<vmem>>, vector<2x1024xf32>
    %cst = arith.constant 0.000000e+00 : f32
    %1 = vector.broadcast %cst : f32 to vector<2x1024xf32>
    %2 = arith.maximumf %1, %0 : vector<2x1024xf32>
    %cst_1 = arith.constant 6.000000e+00 : f32
    %3 = vector.broadcast %cst_1 : f32 to vector<2x1024xf32>
    %4 = arith.minimumf %2, %3 : vector<2x1024xf32>
    %c0_2 = arith.constant 0 : index
    %c0_3 = arith.constant 0 : index
    %5 = vector.load %arg2[%c0_2, %c0_3] : memref<2x1024xf32, #tpu.memory_space<vmem>>, vector<2x1024xf32>
    tpu.vector_store %arg2[%c0_2, %c0_3], %4 {strides = array<i32>} : memref<2x1024xf32, #tpu.memory_space<vmem>>, vector<2x1024xf32>,
    return
  }
  func.func @transform_0(%arg0: i32) -> (i32, i32) {
    %c0_i32 = arith.constant 0 : i32
    %c0_i32_0 = arith.constant 0 : i32
    return %arg0, %c0_i32 : i32, i32
  }
  func.func @transform_1(%arg0: i32) -> (i32, i32) {
    %c0_i32 = arith.constant 0 : i32
    %c0_i32_0 = arith.constant 0 : i32
    return %arg0, %c0_i32 : i32, i32
  }
}

</mosaic_0001>

<bundles_post_ra>
// kernel: _relu6_impl.1
= control target key start
LH: loop header
LB: loop body
LE: loop exit
PB: predicated region body
PF: predicated region fallthrough
CT: control target
= control target key end

     0   :  { %s42_s0 = inlined_call_operand.vmem [shape: f32[2,1024], index: 0, kind: input, shape index: {}]   ;;  %s43_s1 = inlined_call_operand.vmem [shape: f32[2,1024], index: 1, kind: output, shape index: {}]  }
   0x1   :  { %v8_v0 = vld [vmem:[%s42_s0] sm:$0xff]  ;;  %v9_v1 = vld [vmem:[%s42_s0 + $0x8] sm:$0xff] }
   0x2   :  { %v10_v2 = vmax.f32 %v8_v0, 0.0  ;;  %v11_v3 = vmax.f32 %v9_v1, 0.0 }
   0x4   :  { %v12_v4 = vmin.f32 %v10_v2, 6.0  ;;  %v13_v5 = vmin.f32 %v11_v3, 6.0 }
   0x6   :  { %14 = vst [vmem:[%s43_s1] sm:$0xff] %v12_v4  ;;  %15 = vst [vmem:[%s43_s1 + $0x8] sm:$0xff] %v13_v5 }

</bundles_post_ra>
